<compile_context>
chip_gen: v5e
topology: v5e:2x2
jax: 0.10.0
libtpu: 0.0.40
codegen_flags: <defaults>
</compile_context>

<pallas_src>
import jax
import jax.numpy as jnp
from jax.experimental import pallas as pl
from jax.experimental.pallas import tpu as pltpu


def _round_up(n: int, m: int) -> int:
    return ((n + m - 1) // m) * m


def _cdiv(a: int, b: int) -> int:
    return -(-a // b)


def _default_fold() -> int:
    """Fold factor for batch-into-contraction folding.

    4 fills the 256x256 MXUs of v6e / v7x (K = 112 / 256, N = 256 / 128);
    2 keeps every K <= 128 for the 128x128 MXUs of v5e and older.
    """
    try:
        kind = jax.devices()[0].device_kind.lower()
    except Exception:
        return 4
    if any(tag in kind for tag in ("v2", "v3", "v4", "v5")):
        return 2
    return 4


def _block_diag(w, fold):
    # kron(I_fold, w): block-diagonal matrix with `fold` copies of w on the diagonal.
    return jnp.kron(jnp.eye(fold, dtype=w.dtype), w)


def fednet_kernel(x_ref, w1_ref, b1_ref, w2_ref, b2_ref, w3_ref, b3_ref, o_ref):
    # x_ref: (TBf, fold*F) f32 folded batch tile -> cast to bf16 in-kernel
    # (streaming f32 + in-kernel cast is cheaper end-to-end than a separate
    #  wrapper-side cast pass over HBM, and the kernel is MXU-bound anyway).
    x = x_ref[...].astype(jnp.bfloat16)

    # Layer 1 (folded, block-diagonal): bf16 MXU matmul, f32 accumulation.
    h1 = jnp.dot(x, w1_ref[...], preferred_element_type=jnp.float32) + b1_ref[...]
    h1 = jnp.maximum(h1, 0.0)

    # Layer 2 (folded): layer-1's folded output is already the folded input.
    h2 = jnp.dot(h1.astype(jnp.bfloat16), w2_ref[...],
                 preferred_element_type=jnp.float32) + b2_ref[...]
    h2 = jnp.maximum(h2, 0.0)

    # Layer 3 (folded, block-diagonal (fold*32, fold)): one scalar per sample.
    logits = jnp.dot(h2.astype(jnp.bfloat16), w3_ref[...],
                     preferred_element_type=jnp.float32) + b3_ref[...]

    # Numerically safe sigmoid: clamp keeps exp finite so the EUP approximate
    # reciprocal never sees inf; sigmoid already saturates at |logit| ~ 17 in f32.
    z = jnp.clip(logits, -30.0, 30.0)
    o_ref[...] = pl.reciprocal(1.0 + jnp.exp(-z), approx=True)


def fednet_forward(x, params, *, block_b=8192, fold=None):
    """x: (B, F) f32.  Returns (B, 1) f32, matching the PyTorch module."""
    w1, b1, w2, b2, w3, b3 = params
    B, F = x.shape
    if fold is None:
        fold = _default_fold()

    # Tiny pad so B is a multiple of the fold (<= fold-1 rows; no-op for the usual
    # power-of-two batches).  The old tile-alignment pad is gone: the grid relies
    # on Pallas' implicit last-block padding, and garbage rows are sliced off below.
    Bp = _round_up(B, fold)
    if Bp != B:
        x = jnp.pad(x, ((0, Bp - B), (0, 0)))
    Bf = Bp // fold
    xf = x.reshape(Bf, fold * F)          # contiguous row-major reshape: free

    # Block-diagonal folded weights (bf16 for the MXU) and tiled biases (f32).
    w1_bd = _block_diag(w1, fold).astype(jnp.bfloat16)   # (fold*F,  fold*64)
    w2_bd = _block_diag(w2, fold).astype(jnp.bfloat16)   # (fold*64, fold*32)
    w3_bd = _block_diag(w3, fold).astype(jnp.bfloat16)   # (fold*32, fold)
    b1_t = jnp.tile(b1, (1, fold))                       # (1, fold*64)
    b2_t = jnp.tile(b2, (1, fold))                       # (1, fold*32)
    b3_t = jnp.tile(b3, (1, fold))                       # (1, fold)

    # Folded-row batch tile: big enough to amortize per-step pipeline overhead,
    # small enough to keep >= ~4 grid steps (v7x dual-TensorCore sharding) and a
    # few MiB of per-step VMEM on every generation.  Sublane dim -> multiple of 8.
    tbf_cap = max(block_b // fold, 8)
    tbf_target = _round_up(_cdiv(Bf, 4), 8)
    TBf = min(tbf_cap, tbf_target)
    if TBf >= Bf:
        TBf = Bf                                         # single full block
    grid = (_cdiv(Bf, TBf),)

    def const(a):
        return pl.BlockSpec(a.shape, lambda i: (0,) * a.ndim)

    cost = pl.CostEstimate(
        flops=2 * Bp * (F * 64 + 64 * 32 + 32 * 1),
        transcendentals=Bp,
        bytes_accessed=Bp * (F * 4 + 4)
        + 2 * (w1_bd.size + w2_bd.size + w3_bd.size)
        + 4 * (b1_t.size + b2_t.size + b3_t.size),
    )

    out = pl.pallas_call(
        fednet_kernel,
        out_shape=jax.ShapeDtypeStruct((Bf, fold), jnp.float32),
        grid=grid,
        in_specs=[
            pl.BlockSpec((TBf, fold * F), lambda i: (i, 0)),  # x: streamed per tile
            const(w1_bd), const(b1_t),                        # params: resident
            const(w2_bd), const(b2_t),
            const(w3_bd), const(b3_t),
        ],
        out_specs=pl.BlockSpec((TBf, fold), lambda i: (i, 0)),
        compiler_params=pltpu.CompilerParams(
            dimension_semantics=("parallel",),
        ),
        cost_estimate=cost,
    )(xf, w1_bd, b1_t, w2_bd, b2_t, w3_bd, b3_t)

    # (Bf, fold) row-major is exactly flat batch order; slice off any padding.
    return out.reshape(Bp, 1)[:B]


def init_params(key, in_features=28):
    """Deterministic init mimicking PyTorch's default U(-1/sqrt(fan_in), 1/sqrt(fan_in))."""
    dims = [(in_features, 64), (64, 32), (32, 1)]
    params = []
    for fan_in, fan_out in dims:
        kw, kb, key = jax.random.split(key, 3)
        bound = 1.0 / jnp.sqrt(float(fan_in))
        w = jax.random.uniform(kw, (fan_in, fan_out), jnp.float32, -bound, bound)
        # biases kept 2D (1, fan_out) for clean TPU broadcasting inside the kernel
        b = jax.random.uniform(kb, (1, fan_out), jnp.float32, -bound, bound)
        params += [w, b]
    return tuple(params)


def reference_forward(x, params, *, match_kernel_precision=True):
    w1, b1, w2, b2, w3, b3 = params
    if match_kernel_precision:
        bf = jnp.bfloat16
        h1 = jnp.maximum(
            jnp.dot(x.astype(bf), w1.astype(bf),
                    preferred_element_type=jnp.float32) + b1, 0.0)
        h2 = jnp.maximum(
            jnp.dot(h1.astype(bf), w2.astype(bf),
                    preferred_element_type=jnp.float32) + b2, 0.0)
        logits = jnp.dot(h2.astype(bf), w3.astype(bf),
                         preferred_element_type=jnp.float32) + b3
    else:
        h1 = jnp.maximum(x @ w1 + b1, 0.0)
        h2 = jnp.maximum(h1 @ w2 + b2, 0.0)
        logits = h2 @ w3 + b3
    return jax.nn.sigmoid(logits)


if __name__ == "__main__":
    key = jax.random.PRNGKey(0)
    kx, kx2, kp = jax.random.split(key, 3)

    F = 28
    params = init_params(kp, in_features=F)

    # Main check: batch of 64 -> multi-step "parallel" grid.
    B = 64
    x = jax.random.normal(kx, (B, F), jnp.float32)
    out = jax.block_until_ready(fednet_forward(x, params))
    assert out.shape == (B, 1)

    # Tight check vs. a reference mirroring the kernel's bf16 matmul inputs
    # (block-diagonal folding is per-sample exact; residual diff = approx recip).
    ref_bf16 = reference_forward(x, params, match_kernel_precision=True)
    assert jnp.allclose(out, ref_bf16, atol=2e-3), "mismatch vs bf16-matched reference"

    # Looser check vs. the full-f32 PyTorch-equivalent forward.
    ref_f32 = reference_forward(x, params, match_kernel_precision=False)
    assert jnp.allclose(out, ref_f32, atol=2e-2), "mismatch vs f32 reference"

    # Odd batch exercises the tiny fold pad and the implicit partial last block.
    B2 = 13
    x2 = jax.random.normal(kx2, (B2, F), jnp.float32)
    out2 = jax.block_until_ready(fednet_forward(x2, params))
    assert out2.shape == (B2, 1)
    ref2 = reference_forward(x2, params, match_kernel_precision=False)
    assert jnp.allclose(out2, ref2, atol=2e-2), "mismatch on odd batch"

    print("KERNEL_OK")
</pallas_src>

<mosaic_0001>
module attributes {stable_mosaic.version = 11 : i64} {
  func.func @fednet_kernel(%arg0: i32, %arg1: memref<8x112xf32, #tpu.memory_space<vmem>>, %arg2: memref<112x256xbf16, #tpu.memory_space<vmem>>, %arg3: memref<1x256xf32, #tpu.memory_space<vmem>>, %arg4: memref<256x128xbf16, #tpu.memory_space<vmem>>, %arg5: memref<1x128xf32, #tpu.memory_space<vmem>>, %arg6: memref<128x4xbf16, #tpu.memory_space<vmem>>, %arg7: memref<1x4xf32, #tpu.memory_space<vmem>>, %arg8: memref<8x4xf32, #tpu.memory_space<vmem>>) attributes {dimension_semantics = [#tpu.dimension_semantics<parallel>], iteration_bounds = array<i64: 2>, scalar_prefetch = 0 : i64, scratch_operands = 0 : i64, tpu.core_type = #tpu.core_type<tc>, window_params = [{transform_indices = @transform_0, window_bounds = array<i64: 8, 112>}, {pipeline_mode = #tpu.pipeline_mode<synchronous>, transform_indices = @transform_1, window_bounds = array<i64: 112, 256>}, {pipeline_mode = #tpu.pipeline_mode<synchronous>, transform_indices = @transform_2, window_bounds = array<i64: 1, 256>}, {pipeline_mode = #tpu.pipeline_mode<synchronous>, transform_indices = @transform_3, window_bounds = array<i64: 256, 128>}, {pipeline_mode = #tpu.pipeline_mode<synchronous>, transform_indices = @transform_4, window_bounds = array<i64: 1, 128>}, {pipeline_mode = #tpu.pipeline_mode<synchronous>, transform_indices = @transform_5, window_bounds = array<i64: 128, 4>}, {pipeline_mode = #tpu.pipeline_mode<synchronous>, transform_indices = @transform_6, window_bounds = array<i64: 1, 4>}, {transform_indices = @transform_7, window_bounds = array<i64: 8, 4>}]} {
    %c0 = arith.constant 0 : index
    %c0_0 = arith.constant 0 : index
    %0 = vector.load %arg1[%c0, %c0_0] : memref<8x112xf32, #tpu.memory_space<vmem>>, vector<8x112xf32>
    %1 = arith.truncf %0 : vector<8x112xf32> to vector<8x112xbf16>
    %c0_1 = arith.constant 0 : index
    %c0_2 = arith.constant 0 : index
    %2 = vector.load %arg2[%c0_1, %c0_2] : memref<112x256xbf16, #tpu.memory_space<vmem>>, vector<112x256xbf16>
    %cst = arith.constant dense<0.000000e+00> : vector<8x256xf32>
    %3 = tpu.matmul %1, %2, %cst {dimension_numbers = #tpu.dot_dimension_numbers<[1], [0], [0], [1], [0, 0, 1, 1], [], []>} : vector<8x112xbf16>, vector<112x256xbf16>, vector<8x256xf32> -> vector<8x256xf32>
    %c0_3 = arith.constant 0 : index
    %c0_4 = arith.constant 0 : index
    %4 = vector.load %arg3[%c0_3, %c0_4] : memref<1x256xf32, #tpu.memory_space<vmem>>, vector<1x256xf32>
    %5 = vector.broadcast %4 : vector<1x256xf32> to vector<8x256xf32>
    %6 = arith.addf %3, %5 : vector<8x256xf32>
    %cst_5 = arith.constant 0.000000e+00 : f32
    %7 = vector.broadcast %cst_5 : f32 to vector<8x256xf32>
    %8 = arith.maximumf %6, %7 : vector<8x256xf32>
    %9 = arith.truncf %8 : vector<8x256xf32> to vector<8x256xbf16>
    %c0_6 = arith.constant 0 : index
    %c0_7 = arith.constant 0 : index
    %10 = vector.load %arg4[%c0_6, %c0_7] : memref<256x128xbf16, #tpu.memory_space<vmem>>, vector<256x128xbf16>
    %cst_8 = arith.constant dense<0.000000e+00> : vector<8x128xf32>
    %11 = tpu.matmul %9, %10, %cst_8 {dimension_numbers = #tpu.dot_dimension_numbers<[1], [0], [0], [1], [0, 0, 1, 1], [], []>} : vector<8x256xbf16>, vector<256x128xbf16>, vector<8x128xf32> -> vector<8x128xf32>
    %c0_9 = arith.constant 0 : index
    %c0_10 = arith.constant 0 : index
    %12 = vector.load %arg5[%c0_9, %c0_10] : memref<1x128xf32, #tpu.memory_space<vmem>>, vector<1x128xf32>
    %13 = vector.broadcast %12 : vector<1x128xf32> to vector<8x128xf32>
    %14 = arith.addf %11, %13 : vector<8x128xf32>
    %cst_11 = arith.constant 0.000000e+00 : f32
    %15 = vector.broadcast %cst_11 : f32 to vector<8x128xf32>
    %16 = arith.maximumf %14, %15 : vector<8x128xf32>
    %17 = arith.truncf %16 : vector<8x128xf32> to vector<8x128xbf16>
    %c0_12 = arith.constant 0 : index
    %c0_13 = arith.constant 0 : index
    %18 = vector.load %arg6[%c0_12, %c0_13] : memref<128x4xbf16, #tpu.memory_space<vmem>>, vector<128x4xbf16>
    %cst_14 = arith.constant dense<0.000000e+00> : vector<8x4xf32>
    %19 = tpu.matmul %17, %18, %cst_14 {dimension_numbers = #tpu.dot_dimension_numbers<[1], [0], [0], [1], [0, 0, 1, 1], [], []>} : vector<8x128xbf16>, vector<128x4xbf16>, vector<8x4xf32> -> vector<8x4xf32>
    %c0_15 = arith.constant 0 : index
    %c0_16 = arith.constant 0 : index
    %20 = vector.load %arg7[%c0_15, %c0_16] : memref<1x4xf32, #tpu.memory_space<vmem>>, vector<1x4xf32>
    %21 = vector.broadcast %20 : vector<1x4xf32> to vector<8x4xf32>
    %22 = arith.addf %19, %21 : vector<8x4xf32>
    %cst_17 = arith.constant -3.000000e+01 : f32
    %cst_18 = arith.constant 3.000000e+01 : f32
    %23 = vector.broadcast %cst_17 : f32 to vector<8x4xf32>
    %24 = arith.maximumf %23, %22 : vector<8x4xf32>
    %25 = vector.broadcast %cst_18 : f32 to vector<8x4xf32>
    %26 = arith.minimumf %25, %24 : vector<8x4xf32>
    %cst_19 = arith.constant 0.000000e+00 : f32
    %27 = vector.broadcast %cst_19 : f32 to vector<8x4xf32>
    %28 = arith.subf %27, %26 : vector<8x4xf32>
    %29 = math.exp %28 : vector<8x4xf32>
    %cst_20 = arith.constant 1.000000e+00 : f32
    %30 = vector.broadcast %cst_20 : f32 to vector<8x4xf32>
    %31 = arith.addf %30, %29 : vector<8x4xf32>
    %32 = tpu.reciprocal %31 {approx = true} : vector<8x4xf32> -> vector<8x4xf32>
    %c0_21 = arith.constant 0 : index
    %c0_22 = arith.constant 0 : index
    %33 = vector.load %arg8[%c0_21, %c0_22] : memref<8x4xf32, #tpu.memory_space<vmem>>, vector<8x4xf32>
    tpu.vector_store %arg8[%c0_21, %c0_22], %32 {strides = array<i32>} : memref<8x4xf32, #tpu.memory_space<vmem>>, vector<8x4xf32>,
    return
  }
  func.func @transform_0(%arg0: i32) -> (i32, i32) {
    %c0_i32 = arith.constant 0 : i32
    %c0_i32_0 = arith.constant 0 : i32
    return %arg0, %c0_i32 : i32, i32
  }
  func.func @transform_1(%arg0: i32) -> (i32, i32) {
    %c0_i32 = arith.constant 0 : i32
    %c0_i32_0 = arith.constant 0 : i32
    %c0_i32_1 = arith.constant 0 : i32
    return %c0_i32, %c0_i32_0 : i32, i32
  }
  func.func @transform_2(%arg0: i32) -> (i32, i32) {
    %c0_i32 = arith.constant 0 : i32
    %c0_i32_0 = arith.constant 0 : i32
    %c0_i32_1 = arith.constant 0 : i32
    return %c0_i32, %c0_i32_0 : i32, i32
  }
  func.func @transform_3(%arg0: i32) -> (i32, i32) {
    %c0_i32 = arith.constant 0 : i32
    %c0_i32_0 = arith.constant 0 : i32
    %c0_i32_1 = arith.constant 0 : i32
    return %c0_i32, %c0_i32_0 : i32, i32
  }
  func.func @transform_4(%arg0: i32) -> (i32, i32) {
    %c0_i32 = arith.constant 0 : i32
    %c0_i32_0 = arith.constant 0 : i32
    %c0_i32_1 = arith.constant 0 : i32
    return %c0_i32, %c0_i32_0 : i32, i32
  }
  func.func @transform_5(%arg0: i32) -> (i32, i32) {
    %c0_i32 = arith.constant 0 : i32
    %c0_i32_0 = arith.constant 0 : i32
    %c0_i32_1 = arith.constant 0 : i32
    return %c0_i32, %c0_i32_0 : i32, i32
  }
  func.func @transform_6(%arg0: i32) -> (i32, i32) {
    %c0_i32 = arith.constant 0 : i32
    %c0_i32_0 = arith.constant 0 : i32
    %c0_i32_1 = arith.constant 0 : i32
    return %c0_i32, %c0_i32_0 : i32, i32
  }
  func.func @transform_7(%arg0: i32) -> (i32, i32) {
    %c0_i32 = arith.constant 0 : i32
    %c0_i32_0 = arith.constant 0 : i32
    return %arg0, %c0_i32 : i32, i32
  }
}

</mosaic_0001>

<bundles_post_ra>
// kernel: tpu_custom_call.1
= control target key start
LH: loop header
LB: loop body
LE: loop exit
PB: predicated region body
PF: predicated region fallthrough
CT: control target
= control target key end

     0   :  { %12 = vsyncpa [#allocation3], 0  ;;  %s1215_s0 = inlined_call_operand.vmem [shape: f32[16,112], index: 0, kind: input, shape index: {}]   ;;  %s1216_s1 = inlined_call_operand.hbm [shape: bf16[112,256], index: 1, kind: input, shape index: {}]   ;;  %s1217_s2 = inlined_call_operand.vmem [shape: f32[1,256], index: 2, kind: input, shape index: {}]   ;;  %s1218_s3 = inlined_call_operand.hbm [shape: bf16[256,128], index: 3, kind: input, shape index: {}]   ;;  %s1219_s4 = inlined_call_operand.vmem [shape: f32[1,128], index: 4, kind: input, shape index: {}]   ;;  %s1220_s5 = inlined_call_operand.vmem [shape: bf16[128,4], index: 5, kind: input, shape index: {}]   ;;  %s1221_s6 = inlined_call_operand.vmem [shape: f32[1,4], index: 6, kind: input, shape index: {}]   ;;  %s1222_s7 = inlined_call_operand.vmem [shape: f32[16,4], index: 7, kind: output, shape index: {}]  }
   0x1   :  { %13 = vsyncpa [#allocation5], 0  ;;  %s1127_s24 = smov 0  }
   0x2 LB: > { %s213_s27 = sshll.u32 %s1216_s1, 4  ;;  %s1136_s28 = sadd.s32 4294967295, %s1079_s24   ;;  %s1079_s24 = sphi %s1127_s24, %s19_s24   ;;  %s214_s27 = int_to_ptr.hbm [resolvable:$true] %s213_s27 }
   0x3   : > { %p762_p0 = scmp.ge.s32.totalorder %s1079_s24, 1  ;;  %p202_p1 = scmp.lt.s32.totalorder %s1079_s24, 3 }
   0x4   : > { %p981_p2 = scmp.eq.s32.totalorder %s1136_s28, 0  ;;  %s1081_s30 = smov [#allocation2]  }
   0x5   : > { %p1141_p3 = pnand %p762_p0, %p202_p1  ;;  %s215_s8 = sshll.u32 %s1081_s30, 4  ;;  %s216_s8 = int_to_ptr.vmem [resolvable:$true] %s215_s8 }
   0x6   : > { %s230_s11 = sshll.u32 %s1218_s3, 4  ;;  %s1082_s12 = smov [#allocation4]   ;;  %s231_s11 = int_to_ptr.hbm [resolvable:$true] %s230_s11 }
   0x7   : > { %p974_p4 = pneg %p1141_p3  ;;  %s232_s13 = sshll.u32 %s1082_s12, 4  ;;  %s233_s13 = int_to_ptr.vmem [resolvable:$true] %s232_s13 }
   0x8   : > { %s1083_s14 = smov 128   ;;  %s1084_s15 = smov 8  }
   0x9   : > { %p975_p5 = pnand %p981_p2, %p974_p4  ;;  %s1085_s16 = smov 64  }
   0xa   : > { %s1086_s17 = smov 4   ;;  %264 = sbr.rel (%p1141_p3) target bundleno = 497 (0x1f1), region = 48 }
   0xb   : > { %977 = dma.hbm_to_vmem [thread:$0]  (!%p975_p5), %s214_s27, 1792, %s216_s8, [#allocation3], %s1083_s14, %s1083_s14, %s1084_s15  }
   0xc   : > { %980 = dma.hbm_to_vmem [thread:$0]  (!%p975_p5), %s231_s11, 2048, %s233_s13, [#allocation5], %s1085_s16, %s1085_s16, %s1086_s17  }
   0xf   : > { %1070 = dma.done.wait (%p981_p2), [#allocation3], 1792  }
  0x10   : > { %1072 = vsyncadd (%p981_p2), [#allocation3], 4294965504 }
  0x11   : > { %1074 = dma.done.wait (%p981_p2), [#allocation5], 2048  }
  0x12   : > { %1076 = vsyncadd (%p981_p2), [#allocation5], 4294965248  ;;  %v821_v0 = vld [vmem:[#allocation2 + $0x60] sm:$0xf]  ;;  %v941_v1 = vld [vmem:[#allocation2 + $0x64] sm:$0xf0] }
  0x13   : > { %v813_v2 = vld [vmem:[#allocation2 + $0x50] sm:$0xf]  ;;  %v822_v3 = vor.u32 %v941_v1, %v821_v0  ;;  %v939_v4 = vld [vmem:[#allocation2 + $0x54] sm:$0xf0]  ;;  %v805_v6 = vld [vmem:[#allocation2 + $0x40] sm:$0xf] }
  0x14   : > { %v814_v5 = vor.u32 %v939_v4, %v813_v2  ;;  %v937_v7 = vld [vmem:[#allocation2 + $0x44] sm:$0xf0]  ;;  %v797_v9 = vld [vmem:[#allocation2 + $0x30] sm:$0xf]  ;;  %v935_v10 = vld [vmem:[#allocation2 + $0x34] sm:$0xf0] }
  0x15   : > { %406 = vmatpush.bf16.msra.mxu1 %v822_v3  ;;  %v806_v8 = vor.u32 %v937_v7, %v805_v6  ;;  %p300_p6 = scmp.lt.s32.totalorder %s1136_s28, 1  ;;  %v798_v11 = vor.u32 %v935_v10, %v797_v9  ;;  %v789_v12 = vld [vmem:[#allocation2 + $0x20] sm:$0xf]  ;;  %v933_v13 = vld [vmem:[#allocation2 + $0x24] sm:$0xf0]  ;;  %vm401_vm0 = vcmask 916480  }
  0x16   : > { %v790_v14 = vor.u32 %v933_v13, %v789_v12  ;;  %v781_v15 = vld [vmem:[#allocation2 + $0x10] sm:$0xf]  ;;  %v931_v16 = vld [vmem:[#allocation2 + $0x14] sm:$0xf0]  ;;  %v773_v18 = vld [vmem:[#allocation2] sm:$0xf] }
  0x17   : > { %s1225_s28 = smov (!%p300_p6, %s1136_s28), 1  ;;  %v782_v17 = vor.u32 %v931_v16, %v781_v15  ;;  %v929_v19 = vld [vmem:[#allocation2 + $0x4] sm:$0xf0]  ;;  %v940_v20 = vld [vmem:[#allocation2 + $0x64] sm:$0xf]  ;;  %v947_v33 = vld [vmem:[#allocation4 + $0x28] sm:$0xff] }
  0x18   : > { %s769_s18 = sshll.u32 %s1225_s28, 3  ;;  %v823_v21 = vld [vmem:[#allocation2 + $0x68] sm:$0xf0]  ;;  %v774_v22 = vor.u32 %v929_v19, %v773_v18  ;;  %v938_v26 = vld [vmem:[#allocation2 + $0x54] sm:$0xf]  ;;  %v948_v28 = vld [vmem:[#allocation4 + $0x30] sm:$0xff] }
  0x19   : > { %407 = vmatpush.bf16.msra.mxu1 %v814_v5  ;;  %s303_s21 = scalar_lea.vmem %s1215_s0, %s769_s18  ;;  %v949_v24 = vld [vmem:[#allocation4 + $0x38] sm:$0xff]  ;;  %v826_v25 = vor.u32 %v940_v20, %v823_v21  ;;  %v815_v27 = vld [vmem:[#allocation2 + $0x58] sm:$0xf0]  ;;  %v936_v31 = vld [vmem:[#allocation2 + $0x44] sm:$0xf]  ;;  %s307_s27 = scalar_lea.vmem %s1222_s7, %s769_s18  ;;  %vm683_vm1 = vcmask 31744  }
  0x1a   : > { %v309_v23 = vld [vmem:[%s303_s21] sm:$0xff]  ;;  %567 = vmatpush.bf16.msra.mxu2 %v949_v24  ;;  %v818_v30 = vor.u32 %v938_v26, %v815_v27  ;;  %v807_v32 = vld [vmem:[#allocation2 + $0x48] sm:$0xf0]  ;;  %v934_v35 = vld [vmem:[#allocation2 + $0x34] sm:$0xf] }
  0x1b   : > { %v310_v29 = vpack.c.bf16 %v309_v23, %v309_v23  ;;  %v810_v34 = vor.u32 %v936_v31, %v807_v32  ;;  %v799_v36 = vld [vmem:[#allocation2 + $0x38] sm:$0xf0]  ;;  %v946_v37 = vld [vmem:[#allocation4 + $0x20] sm:$0xff]  ;;  %v932_v39 = vld [vmem:[#allocation2 + $0x24] sm:$0xf] }
  0x1c   : > { %v802_v38 = vor.u32 %v934_v35, %v799_v36  ;;  %v791_v40 = vld [vmem:[#allocation2 + $0x28] sm:$0xf0]  ;;  %v930_v43 = vld [vmem:[#allocation2 + $0x14] sm:$0xf]  ;;  %v783_v44 = vld [vmem:[#allocation2 + $0x18] sm:$0xf0] }
  0x1d   : > { %408 = vmatpush.bf16.msra.mxu1 %v806_v8  ;;  %v945_v41 = vld [vmem:[#allocation4 + $0x18] sm:$0xff]  ;;  %v794_v42 = vor.u32 %v932_v39, %v791_v40  ;;  %v944_v45 = vld [vmem:[#allocation4 + $0x10] sm:$0xff]  ;;  %v786_v46 = vor.u32 %v930_v43, %v783_v44  ;;  %v943_v50 = vld [vmem:[#allocation4 + $0x8] sm:$0xff] }
  0x1e   : > { %568 = vmatpush.bf16.msra.mxu2 %v948_v28  ;;  %v928_v47 = vld [vmem:[#allocation2 + $0x4] sm:$0xf]  ;;  %v775_v48 = vld [vmem:[#allocation2 + $0x8] sm:$0xf0]  ;;  %v942_v52 = vld [vmem:[#allocation4] sm:$0xff] }
  0x1f   : > { %v778_v49 = vor.u32 %v928_v47, %v775_v48  ;;  %v957_v51 = vld [vmem:[#allocation4 + $0x78] sm:$0xff]  ;;  %v956_v53 = vld [vmem:[#allocation4 + $0x70] sm:$0xff]  ;;  %v955_v54 = vld [vmem:[#allocation4 + $0x68] sm:$0xff] }
  0x20   : > { %580 = vmatpush.bf16.msra.mxu3 %v957_v51  ;;  %v954_v55 = vld [vmem:[#allocation4 + $0x60] sm:$0xff]  ;;  %v953_v56 = vld [vmem:[#allocation4 + $0x58] sm:$0xff]  ;;  %v952_v57 = vld [vmem:[#allocation4 + $0x50] sm:$0xff] }
  0x21   : > { %409 = vmatpush.bf16.msra.mxu1 %v798_v11  ;;  %v951_v58 = vld [vmem:[#allocation4 + $0x48] sm:$0xff]  ;;  %v325_v59 = vld [vmem:[%s1217_s2] sm:$0x3]  ;;  %v950_v60 = vld [vmem:[#allocation4 + $0x40] sm:$0xff] }
  0x22   : > { %569 = vmatpush.bf16.msra.mxu2 %v947_v33  ;;  %v327_v61 = vperm.slane %v325_v59, 0  ;;  %v328_v3 = vperm.slane %v325_v59, 1  ;;  %v965_v9 = vld [vmem:[%s1220_s5 + $0x38] sm:$0xff]  ;;  %v964_v10 = vld [vmem:[%s1220_s5 + $0x30] sm:$0xff]  ;;  %v963_v11 = vld [vmem:[%s1220_s5 + $0x28] sm:$0xff] }
  0x23   : > { %663 = vmatpush.bf16.msra.mxu0 %v965_v9  ;;  %v962_v12 = vld [vmem:[%s1220_s5 + $0x20] sm:$0xff]  ;;  %v961_v13 = vld [vmem:[%s1220_s5 + $0x18] sm:$0xff]  ;;  %v959_v15 = vld [vmem:[%s1220_s5 + $0x8] sm:$0xff] }
  0x24   : > { %581 = vmatpush.bf16.msra.mxu3 %v956_v53  ;;  %v958_v16 = vld [vmem:[%s1220_s5] sm:$0xff] }
  0x25   : > { %410 = vmatpush.bf16.msra.mxu1 %v790_v14  ;;  %v960_v14 = vld [vmem:[%s1220_s5 + $0x10] sm:$0xff]  ;;  %v999_v19 = vld [vmem:[%s1219_s4] ss:$0 sm:$0xff] }
  0x26   : > { %570 = vmatpush.bf16.msra.mxu2 %v946_v37  ;;  %v1000_v26 = vld [vmem:[%s1221_s6] ss:$0 sm:$0xff] }
  0x27   : > { %664 = vmatpush.bf16.msra.mxu0 %v964_v10 }
  0x28   : > { %582 = vmatpush.bf16.msra.mxu3 %v955_v54 }
  0x29   : > { %411 = vmatpush.bf16.msra.mxu1 %v782_v17 }
  0x2a   : > { %571 = vmatpush.bf16.msra.mxu2 %v945_v41 }
  0x2b   : > { %665 = vmatpush.bf16.msra.mxu0 %v963_v11 }
  0x2c   : > { %583 = vmatpush.bf16.msra.mxu3 %v954_v55 }
  0x2d   : > { %412 = vmatpush.bf16.msra.mxu1 %v774_v22 }
  0x2e   : > { %572 = vmatpush.bf16.msra.mxu2 %v944_v45 }
  0x2f   : > { %666 = vmatpush.bf16.msra.mxu0 %v962_v12 }
  0x30   : > { %827 = vmatmul.msk.bf16.vlgmr.msra.gmra.mxu1 %vm401_vm0, %v310_v29  ;;  %584 = vmatpush.bf16.msra.mxu3 %v953_v56 }
  0x31   : > { %419 = vmatpush.bf16.msrb.mxu1 %v826_v25 }
  0x32   : > { %573 = vmatpush.bf16.msra.mxu2 %v943_v50 }
  0x33   : > { %667 = vmatpush.bf16.msra.mxu0 %v961_v13 }
  0x34   : > { %585 = vmatpush.bf16.msra.mxu3 %v952_v57 }
  0x35   : > { %420 = vmatpush.bf16.msrb.mxu1 %v818_v30 }
  0x36   : > { %574 = vmatpush.bf16.msra.mxu2 %v942_v52 }
  0x37   : > { %668 = vmatpush.bf16.msra.mxu0 %v960_v14 }
  0x38   : > { %586 = vmatpush.bf16.msra.mxu3 %v951_v58 }
  0x39   : > { %421 = vmatpush.bf16.msrb.mxu1 %v810_v34 }
  0x3b   : > { %669 = vmatpush.bf16.msra.mxu0 %v959_v15 }
  0x3c   : > { %587 = vmatpush.bf16.msra.mxu3 %v950_v60 }
  0x3d   : > { %422 = vmatpush.bf16.msrb.mxu1 %v802_v38 }
  0x3f   : > { %670 = vmatpush.bf16.msra.mxu0 %v958_v16 }
  0x41   : > { %423 = vmatpush.bf16.msrb.mxu1 %v794_v42 }
  0x45   : > { %424 = vmatpush.bf16.msrb.mxu1 %v786_v46 }
  0x49   : > { %425 = vmatpush.bf16.msrb.mxu1 %v778_v49 }
  0x4c   : > { %828 = vmatmul.msk.bf16.vlgmr.msrb.gmra.mxu1 %vm401_vm0, %v310_v29 }
  0xad   : > { %v414_v62 = vpop.f32.mrf.mxu1 }
  0xae   : > { %v415_v63 = vadd.f32 %v414_v62, %v327_v61 }
  0xb0   : > { %v431_v0 = vmax.f32 %v415_v63, 0.0 }
  0xb2   : > { %v433_v1 = vpack.c.bf16 %v431_v0, %v431_v0 }
  0xb4   : > { %575 = vmatmul.bf16.vlgmr.msra.gmra.mxu2 %v433_v1 }
  0xb5   : > { %v416_v2 = vpop.f32.mrf.mxu1 }
  0xc9   : > { %v427_v4 = vpop.f32.mrf.mxu1 }
  0xca   : > { %v428_v5 = vadd.f32 %v427_v4, %v328_v3 }
  0xcc   : > { %v432_v6 = vmax.f32 %v428_v5, 0.0 }
  0xce   : > { %v434_v7 = vpack.c.bf16 %v432_v6, %v432_v6 }
  0xd0   : > { %588 = vmatmul.bf16.vlgmr.msra.gmra.mxu3 %v434_v7 }
  0xd1   : > { %v429_v8 = vpop.f32.mrf.mxu1 }
 0x137   : > { %v576_v17 = vpop.f32.mrf.mxu2 }
 0x138   : > { %v577_v20 = vadd.f32 %v999_v19, %v576_v17 }
 0x13f   : > { %v578_v18 = vpop.f32.mrf.mxu2 }
 0x153   : > { %v589_v21 = vpop.f32.mrf.mxu3 }
 0x154   : > { %v590_v22 = vadd.f32 %v589_v21, %v577_v20 }
 0x156   : > { %v593_v23 = vmax.f32 %v590_v22, 0.0 }
 0x158   : > { %v594_v24 = vpack.c.bf16 %v593_v23, %v593_v23 }
 0x15a   : > { %671 = vmatmul.bf16.vlgmr.msra.gmra.mxu0 %v594_v24 }
 0x15b   : > { %v591_v25 = vpop.f32.mrf.mxu3 }
 0x1d7   : > { %v672_v27 = vpop.f32.mrf.mxu0 }
 0x1d8   : > { %v673_v28 = vadd.f32 %v1000_v26, %v672_v27 }
 0x1da   : > { %v925_v29 = vclamps-f32 %v673_v28, 30.0 }
 0x1dc   : > { %v678_v30 = vsub.f32 0.0, %v925_v29 }
 0x1de   : > { %v679_v31 = vmul.f32 1.442695, %v678_v30 }
 0x1df   : > { %v674_v32 = vpop.f32.mrf.mxu0 }
 0x1e0   : > { %1001 = vpow2.f32 %v679_v31 }
 0x1e6   : > { %v1002_v33 = vpop.eup %1001 }
 0x1e7   : > { %v681_v34 = vadd.f32 1.0, %v1002_v33 }
 0x1e9   : > { %1003 = vrcp.f32 %v681_v34 }
 0x1ef   : > { %v1004_v35 = vpop.eup %1003 }
 0x1f0   : > { %684 = vst.msk [vmem:[%s307_s27] sm:$0xff] %vm683_vm1, %v1004_v35 }
 0x1f1 PF: > { %s19_s24 = sadd.s32 1, %s1079_s24  }
 0x1f2   : > { %p16_p7 = scmp.ge.s32.totalorder %s19_s24, 4  }
 0x1f4   :  { %18 = sbr.rel (!%p16_p7) target bundleno = 2 (0x2), region = 87 }
 0x1f9   :  { %704 = vsyncpa [#allocation3], 1 }
 0x1fa   :  { %706 = vsyncpa [#allocation3 + $0x1], 1 }
 0x1fb   :  { %707 = vsyncpa [#allocation5], 1 }

</bundles_post_ra>
